<compile_context>
chip_gen: v6e
topology: v6e:2x2x1
jax: 0.10.0
libtpu: 0.0.40
codegen_flags: <defaults>
</compile_context>

<pallas_src>
import numpy as np
import jax
import jax.numpy as jnp
from jax.experimental import pallas as pl
from jax.experimental.pallas import tpu as pltpu


def _round_up(x, m):
    return ((x + m - 1) // m) * m


def _cdiv(a, b):
    return (a + b - 1) // b


def _vmem_cap_bytes():
    # Chip-aware physical VMEM (v7x: 64 MiB, v5e/v6e: 128 MiB). Conservative
    # fallback if the query is unavailable.
    try:
        return int(pltpu.get_tpu_info().vmem_capacity_bytes)
    except Exception:
        return 64 * 1024 * 1024


def _fused_head_kernel(pool_ref, cls_ref, w1_ref, b1_ref, w2_ref, b2_ref, o_ref):
    # pool:      (TB, Nc) f32  pooling matrix (1/len_i per chunk of doc i)
    # chunk CLS: (Nc, H)  f32
    # dense w1:  (H, H)   bf16   b1: (1, H)  f32
    # out_proj:  (H, LP)  f32    b2: (1, LP) f32
    # Dropout(p=0.1) is identity in eval mode.
    # 1) fused per-document mean pool (f32 matmul, tiny K=Nc).
    pooled = jnp.dot(pool_ref[...], cls_ref[...], preferred_element_type=jnp.float32)
    # 2) dense: bf16 MXU operands, f32 accumulation; bias add + tanh stay f32
    #    (v5e VPU/EUP have no bf16 path).
    h = jnp.dot(pooled.astype(jnp.bfloat16), w1_ref[...],
                preferred_element_type=jnp.float32) + b1_ref[...]
    h = jnp.tanh(h)
    # 3) out_proj kept in f32 (tiny matmul) for closer-to-f32-PyTorch numerics.
    o_ref[...] = (jnp.dot(h, w2_ref[...], preferred_element_type=jnp.float32)
                  + b2_ref[...])


def long_doc_classifier_head(chunk_cls, lengths, w_dense, b_dense, w_out, b_out,
                             *, batch_tile=512):
    """chunk_cls: (Nc, H) per-chunk CLS embeddings from the LM
       lengths:   static Python chunk counts per document (sum == Nc)
       w_dense:   (H, H)  pre-transposed so y = x @ w_dense + b_dense
       b_dense:   (H,)
       w_out:     (H, L)  pre-transposed
       b_out:     (L,)
       Returns (B, L) logits.
    """
    lengths = [int(l) for l in lengths]          # static, as in the torch module
    Nc, H = chunk_cls.shape
    B = len(lengths)
    L = w_out.shape[1]
    assert sum(lengths) == Nc

    # Batch tiling: split B as evenly as possible (<=8 dead rows per tile), and
    # give the "parallel" grid axis >=2 steps when B allows so both v7x
    # TensorCores get work (one extra grid step is ~0.35us on 1-TC chips).
    n_tiles = max(1, _cdiv(B, batch_tile))
    TB = _round_up(_cdiv(B, n_tiles), 8)
    if B > 8 and _cdiv(B, TB) < 2:
        TB = _round_up(_cdiv(B, 2), 8)
    Bp = _round_up(B, TB)
    # Lane-dense output: pad num_labels to a multiple of 128 (unmasked vst);
    # real labels sliced back off below.
    LP = _round_up(L, 128)

    # Mean-pool as a matmul: pool[i, c] = 1/len_i if chunk c belongs to doc i.
    # Built on host from the static lengths (same staticness as torch.split).
    seg = np.concatenate([np.full(l, i, dtype=np.int64)
                          for i, l in enumerate(lengths)])
    pool_np = (seg[None, :] == np.arange(B)[:, None]).astype(np.float32)
    pool_np /= np.asarray(lengths, dtype=np.float32)[:, None]
    pool = jnp.asarray(np.pad(pool_np, ((0, Bp - B), (0, 0))))

    cls_f32 = chunk_cls.astype(jnp.float32)
    w1 = w_dense.astype(jnp.bfloat16)                  # dominant matmul in bf16
    b1 = b_dense.reshape(1, H).astype(jnp.float32)
    w2 = jnp.pad(w_out.astype(jnp.float32), ((0, 0), (0, LP - L)))
    b2 = jnp.pad(b_out.astype(jnp.float32), (0, LP - L)).reshape(1, LP)

    # VMEM budget: single-buffered resident weights/chunk-CLS + double-buffered
    # streamed pool/out tiles + f32 intermediates, ~30% headroom, capped below
    # the chip's physical VMEM.
    resident = Nc * H * 4 + H * H * 2 + H * 4 + H * LP * 4 + LP * 4
    streamed = 2 * (TB * Nc * 4 + TB * LP * 4)
    work = 3 * TB * H * 4
    vmem_limit = max(4 * 1024 * 1024, int(1.3 * (resident + streamed + work)))
    vmem_limit = min(vmem_limit, _vmem_cap_bytes() - 8 * 1024 * 1024)
    vmem_limit = max(vmem_limit, 4 * 1024 * 1024)

    cost = pl.CostEstimate(
        flops=2 * Bp * (Nc * H + H * H + H * LP),
        transcendentals=Bp * H,
        bytes_accessed=(Bp * Nc * 4 + Nc * H * 4 + H * H * 2 + H * 4
                        + H * LP * 4 + LP * 4 + Bp * LP * 4),
    )

    def _build(single_buffer_resident):
        def _resident(shape):
            kw = {}
            if single_buffer_resident:
                # Constant index_map -> block stays resident across the batch
                # loop; Buffered(1) halves its VMEM footprint vs the default
                # double-buffer.
                kw["pipeline_mode"] = pl.Buffered(1)
            return pl.BlockSpec(shape, lambda i: (0, 0), **kw)

        return pl.pallas_call(
            _fused_head_kernel,
            out_shape=jax.ShapeDtypeStruct((Bp, LP), jnp.float32),
            grid=(Bp // TB,),
            in_specs=[
                pl.BlockSpec((TB, Nc), lambda i: (i, 0)),   # pool tile streams
                _resident((Nc, H)),                          # chunk CLS (f32)
                _resident((H, H)),                           # dense weight (bf16)
                _resident((1, H)),                           # dense bias
                _resident((H, LP)),                          # out_proj weight (f32)
                _resident((1, LP)),                          # out_proj bias
            ],
            out_specs=pl.BlockSpec((TB, LP), lambda i: (i, 0)),
            compiler_params=pltpu.CompilerParams(
                dimension_semantics=("parallel",),
                vmem_limit_bytes=vmem_limit),
            cost_estimate=cost,
        )

    try:
        out = _build(True)(pool, cls_f32, w1, b1, w2, b2)
    except Exception:
        # Fallback: default (double) buffering if Buffered(1) is rejected.
        out = _build(False)(pool, cls_f32, w1, b1, w2, b2)

    # TODO(synk): if H grows so that bf16 w_dense (H*H*2 bytes, single-buffered)
    # no longer fits ~48 MiB of usable v7x VMEM (H >~ 5K), switch the dense
    # matmul to a K-tiled path: extra "arbitrary" grid axis over H with an f32
    # VMEM accumulator + pl.when init/finalize (or an inner pltpu.emit_pipeline)
    # instead of keeping w_dense resident.
    return out[:B, :L].astype(chunk_cls.dtype)


def reference_forward(chunk_cls, lengths, w_dense, b_dense, w_out, b_out):
    # Mirrors the kernel numerics: f32 mean-pool, bf16 dense matmul with f32
    # accumulation, f32 tanh/bias, f32 out_proj.
    offs = np.cumsum([0] + list(lengths))
    feats = jnp.stack([jnp.mean(chunk_cls[offs[i]:offs[i + 1]], axis=0)
                       for i in range(len(lengths))])
    h = jnp.dot(feats.astype(jnp.bfloat16), w_dense.astype(jnp.bfloat16),
                preferred_element_type=jnp.float32) + b_dense
    h = jnp.tanh(h)
    return jnp.dot(h, w_out.astype(jnp.float32),
                   preferred_element_type=jnp.float32) + b_out


if __name__ == "__main__":
    # Small, module-consistent shapes: 2 documents split into [3, 2] chunks,
    # hidden_size=32, num_labels=4.
    H, L = 32, 4
    lengths = [3, 2]
    n_chunks = sum(lengths)

    key = jax.random.PRNGKey(0)
    k_x, k_w1, k_b1, k_w2, k_b2 = jax.random.split(key, 5)

    # TODO(synk): tokenizer + pretrained AutoModelForMaskedLM transformer are
    # upstream of this head and have no Pallas equivalent here; stand in with
    # deterministic random chunk-level CLS embeddings.
    chunk_cls = jax.random.normal(k_x, (n_chunks, H), dtype=jnp.float32)

    # Deterministic synthetic parameters, stored pre-transposed relative to
    # PyTorch's (out, in) nn.Linear layout (y = x @ W + b).
    w_dense = jax.random.normal(k_w1, (H, H), dtype=jnp.float32) * 0.02
    b_dense = jax.random.normal(k_b1, (H,), dtype=jnp.float32) * 0.02
    w_out = jax.random.normal(k_w2, (H, L), dtype=jnp.float32) * 0.02
    b_out = jax.random.normal(k_b2, (L,), dtype=jnp.float32) * 0.02

    out = long_doc_classifier_head(chunk_cls, lengths,
                                   w_dense, b_dense, w_out, b_out)
    out = jax.block_until_ready(out)

    ref = reference_forward(chunk_cls, lengths, w_dense, b_dense, w_out, b_out)
    assert out.shape == (len(lengths), L)
    assert jnp.allclose(out, ref, atol=1e-3, rtol=1e-3), "mismatch vs reference"

    # TODO(synk): train-mode dropout (p=0.1) could be added via pltpu.prng_seed
    # + pltpu.stateful_bernoulli; eval-mode (identity) semantics used here.
    print("KERNEL_OK")
</pallas_src>

<mosaic_0001>
module attributes {stable_mosaic.version = 11 : i64} {
  func.func @_fused_head_kernel(%arg0: i32, %arg1: memref<8x5xf32, #tpu.memory_space<vmem>>, %arg2: memref<5x32xf32, #tpu.memory_space<vmem>>, %arg3: memref<32x32xbf16, #tpu.memory_space<vmem>>, %arg4: memref<1x32xf32, #tpu.memory_space<vmem>>, %arg5: memref<32x128xf32, #tpu.memory_space<vmem>>, %arg6: memref<1x128xf32, #tpu.memory_space<vmem>>, %arg7: memref<8x128xf32, #tpu.memory_space<vmem>>) attributes {dimension_semantics = [#tpu.dimension_semantics<parallel>], iteration_bounds = array<i64: 1>, scalar_prefetch = 0 : i64, scratch_operands = 0 : i64, tpu.core_type = #tpu.core_type<tc>, window_params = [{transform_indices = @transform_0, window_bounds = array<i64: 8, 5>}, {pipeline_mode = #tpu.pipeline_mode<synchronous>, transform_indices = @transform_1, window_bounds = array<i64: 5, 32>}, {pipeline_mode = #tpu.pipeline_mode<synchronous>, transform_indices = @transform_2, window_bounds = array<i64: 32, 32>}, {pipeline_mode = #tpu.pipeline_mode<synchronous>, transform_indices = @transform_3, window_bounds = array<i64: 1, 32>}, {pipeline_mode = #tpu.pipeline_mode<synchronous>, transform_indices = @transform_4, window_bounds = array<i64: 32, 128>}, {pipeline_mode = #tpu.pipeline_mode<synchronous>, transform_indices = @transform_5, window_bounds = array<i64: 1, 128>}, {transform_indices = @transform_6, window_bounds = array<i64: 8, 128>}]} {
    %c0 = arith.constant 0 : index
    %c0_0 = arith.constant 0 : index
    %0 = vector.load %arg1[%c0, %c0_0] : memref<8x5xf32, #tpu.memory_space<vmem>>, vector<8x5xf32>
    %c0_1 = arith.constant 0 : index
    %c0_2 = arith.constant 0 : index
    %1 = vector.load %arg2[%c0_1, %c0_2] : memref<5x32xf32, #tpu.memory_space<vmem>>, vector<5x32xf32>
    %cst = arith.constant dense<0.000000e+00> : vector<8x32xf32>
    %2 = tpu.matmul %0, %1, %cst {dimension_numbers = #tpu.dot_dimension_numbers<[1], [0], [0], [1], [0, 0, 1, 1], [], []>} : vector<8x5xf32>, vector<5x32xf32>, vector<8x32xf32> -> vector<8x32xf32>
    %3 = arith.truncf %2 : vector<8x32xf32> to vector<8x32xbf16>
    %c0_3 = arith.constant 0 : index
    %c0_4 = arith.constant 0 : index
    %4 = vector.load %arg3[%c0_3, %c0_4] : memref<32x32xbf16, #tpu.memory_space<vmem>>, vector<32x32xbf16>
    %cst_5 = arith.constant dense<0.000000e+00> : vector<8x32xf32>
    %5 = tpu.matmul %3, %4, %cst_5 {dimension_numbers = #tpu.dot_dimension_numbers<[1], [0], [0], [1], [0, 0, 1, 1], [], []>} : vector<8x32xbf16>, vector<32x32xbf16>, vector<8x32xf32> -> vector<8x32xf32>
    %c0_6 = arith.constant 0 : index
    %c0_7 = arith.constant 0 : index
    %6 = vector.load %arg4[%c0_6, %c0_7] : memref<1x32xf32, #tpu.memory_space<vmem>>, vector<1x32xf32>
    %7 = vector.broadcast %6 : vector<1x32xf32> to vector<8x32xf32>
    %8 = arith.addf %5, %7 : vector<8x32xf32>
    %9 = math.tanh %8 : vector<8x32xf32>
    %c0_8 = arith.constant 0 : index
    %c0_9 = arith.constant 0 : index
    %10 = vector.load %arg5[%c0_8, %c0_9] : memref<32x128xf32, #tpu.memory_space<vmem>>, vector<32x128xf32>
    %cst_10 = arith.constant dense<0.000000e+00> : vector<8x128xf32>
    %11 = tpu.matmul %9, %10, %cst_10 {dimension_numbers = #tpu.dot_dimension_numbers<[1], [0], [0], [1], [0, 0, 1, 1], [], []>} : vector<8x32xf32>, vector<32x128xf32>, vector<8x128xf32> -> vector<8x128xf32>
    %c0_11 = arith.constant 0 : index
    %c0_12 = arith.constant 0 : index
    %12 = vector.load %arg6[%c0_11, %c0_12] : memref<1x128xf32, #tpu.memory_space<vmem>>, vector<1x128xf32>
    %13 = vector.broadcast %12 : vector<1x128xf32> to vector<8x128xf32>
    %14 = arith.addf %11, %13 : vector<8x128xf32>
    %c0_13 = arith.constant 0 : index
    %c0_14 = arith.constant 0 : index
    %15 = vector.load %arg7[%c0_13, %c0_14] : memref<8x128xf32, #tpu.memory_space<vmem>>, vector<8x128xf32>
    tpu.vector_store %arg7[%c0_13, %c0_14], %14 {strides = array<i32>} : memref<8x128xf32, #tpu.memory_space<vmem>>, vector<8x128xf32>,
    return
  }
  func.func @transform_0(%arg0: i32) -> (i32, i32) {
    %c0_i32 = arith.constant 0 : i32
    %c0_i32_0 = arith.constant 0 : i32
    return %arg0, %c0_i32 : i32, i32
  }
  func.func @transform_1(%arg0: i32) -> (i32, i32) {
    %c0_i32 = arith.constant 0 : i32
    %c0_i32_0 = arith.constant 0 : i32
    %c0_i32_1 = arith.constant 0 : i32
    return %c0_i32, %c0_i32_0 : i32, i32
  }
  func.func @transform_2(%arg0: i32) -> (i32, i32) {
    %c0_i32 = arith.constant 0 : i32
    %c0_i32_0 = arith.constant 0 : i32
    %c0_i32_1 = arith.constant 0 : i32
    return %c0_i32, %c0_i32_0 : i32, i32
  }
  func.func @transform_3(%arg0: i32) -> (i32, i32) {
    %c0_i32 = arith.constant 0 : i32
    %c0_i32_0 = arith.constant 0 : i32
    %c0_i32_1 = arith.constant 0 : i32
    return %c0_i32, %c0_i32_0 : i32, i32
  }
  func.func @transform_4(%arg0: i32) -> (i32, i32) {
    %c0_i32 = arith.constant 0 : i32
    %c0_i32_0 = arith.constant 0 : i32
    %c0_i32_1 = arith.constant 0 : i32
    return %c0_i32, %c0_i32_0 : i32, i32
  }
  func.func @transform_5(%arg0: i32) -> (i32, i32) {
    %c0_i32 = arith.constant 0 : i32
    %c0_i32_0 = arith.constant 0 : i32
    %c0_i32_1 = arith.constant 0 : i32
    return %c0_i32, %c0_i32_0 : i32, i32
  }
  func.func @transform_6(%arg0: i32) -> (i32, i32) {
    %c0_i32 = arith.constant 0 : i32
    %c0_i32_0 = arith.constant 0 : i32
    return %arg0, %c0_i32 : i32, i32
  }
}

module attributes {stable_mosaic.version = 11 : i64} {
  func.func @_fused_head_kernel(%arg0: i32, %arg1: memref<8x5xf32, #tpu.memory_space<vmem>>, %arg2: memref<5x32xf32, #tpu.memory_space<vmem>>, %arg3: memref<32x32xbf16, #tpu.memory_space<vmem>>, %arg4: memref<1x32xf32, #tpu.memory_space<vmem>>, %arg5: memref<32x128xf32, #tpu.memory_space<vmem>>, %arg6: memref<1x128xf32, #tpu.memory_space<vmem>>, %arg7: memref<8x128xf32, #tpu.memory_space<vmem>>) attributes {dimension_semantics = [#tpu.dimension_semantics<parallel>], iteration_bounds = array<i64: 1>, scalar_prefetch = 0 : i64, scratch_operands = 0 : i64, tpu.core_type = #tpu.core_type<tc>, window_params = [{transform_indices = @transform_0, window_bounds = array<i64: 8, 5>}, {pipeline_mode = #tpu.pipeline_mode<synchronous>, transform_indices = @transform_1, window_bounds = array<i64: 5, 32>}, {pipeline_mode = #tpu.pipeline_mode<synchronous>, transform_indices = @transform_2, window_bounds = array<i64: 32, 32>}, {pipeline_mode = #tpu.pipeline_mode<synchronous>, transform_indices = @transform_3, window_bounds = array<i64: 1, 32>}, {pipeline_mode = #tpu.pipeline_mode<synchronous>, transform_indices = @transform_4, window_bounds = array<i64: 32, 128>}, {pipeline_mode = #tpu.pipeline_mode<synchronous>, transform_indices = @transform_5, window_bounds = array<i64: 1, 128>}, {transform_indices = @transform_6, window_bounds = array<i64: 8, 128>}]} {
    %c0 = arith.constant 0 : index
    %c0_0 = arith.constant 0 : index
    %0 = vector.load %arg1[%c0, %c0_0] : memref<8x5xf32, #tpu.memory_space<vmem>>, vector<8x5xf32>
    %c0_1 = arith.constant 0 : index
    %c0_2 = arith.constant 0 : index
    %1 = vector.load %arg2[%c0_1, %c0_2] : memref<5x32xf32, #tpu.memory_space<vmem>>, vector<5x32xf32>
    %cst = arith.constant dense<0.000000e+00> : vector<8x32xf32>
    %2 = tpu.matmul %0, %1, %cst {dimension_numbers = #tpu.dot_dimension_numbers<[1], [0], [0], [1], [0, 0, 1, 1], [], []>} : vector<8x5xf32>, vector<5x32xf32>, vector<8x32xf32> -> vector<8x32xf32>
    %3 = arith.truncf %2 : vector<8x32xf32> to vector<8x32xbf16>
    %c0_3 = arith.constant 0 : index
    %c0_4 = arith.constant 0 : index
    %4 = vector.load %arg3[%c0_3, %c0_4] : memref<32x32xbf16, #tpu.memory_space<vmem>>, vector<32x32xbf16>
    %cst_5 = arith.constant dense<0.000000e+00> : vector<8x32xf32>
    %5 = tpu.matmul %3, %4, %cst_5 {dimension_numbers = #tpu.dot_dimension_numbers<[1], [0], [0], [1], [0, 0, 1, 1], [], []>} : vector<8x32xbf16>, vector<32x32xbf16>, vector<8x32xf32> -> vector<8x32xf32>
    %c0_6 = arith.constant 0 : index
    %c0_7 = arith.constant 0 : index
    %6 = vector.load %arg4[%c0_6, %c0_7] : memref<1x32xf32, #tpu.memory_space<vmem>>, vector<1x32xf32>
    %7 = vector.broadcast %6 : vector<1x32xf32> to vector<8x32xf32>
    %8 = arith.addf %5, %7 : vector<8x32xf32>
    %9 = math.tanh %8 : vector<8x32xf32>
    %c0_8 = arith.constant 0 : index
    %c0_9 = arith.constant 0 : index
    %10 = vector.load %arg5[%c0_8, %c0_9] : memref<32x128xf32, #tpu.memory_space<vmem>>, vector<32x128xf32>
    %cst_10 = arith.constant dense<0.000000e+00> : vector<8x128xf32>
    %11 = tpu.matmul %9, %10, %cst_10 {dimension_numbers = #tpu.dot_dimension_numbers<[1], [0], [0], [1], [0, 0, 1, 1], [], []>} : vector<8x32xf32>, vector<32x128xf32>, vector<8x128xf32> -> vector<8x128xf32>
    %c0_11 = arith.constant 0 : index
    %c0_12 = arith.constant 0 : index
    %12 = vector.load %arg6[%c0_11, %c0_12] : memref<1x128xf32, #tpu.memory_space<vmem>>, vector<1x128xf32>
    %13 = vector.broadcast %12 : vector<1x128xf32> to vector<8x128xf32>
    %14 = arith.addf %11, %13 : vector<8x128xf32>
    %c0_13 = arith.constant 0 : index
    %c0_14 = arith.constant 0 : index
    %15 = vector.load %arg7[%c0_13, %c0_14] : memref<8x128xf32, #tpu.memory_space<vmem>>, vector<8x128xf32>
    tpu.vector_store %arg7[%c0_13, %c0_14], %14 {strides = array<i32>} : memref<8x128xf32, #tpu.memory_space<vmem>>, vector<8x128xf32>,
    return
  }
  func.func @transform_0(%arg0: i32) -> (i32, i32) {
    %c0_i32 = arith.constant 0 : i32
    %c0_i32_0 = arith.constant 0 : i32
    return %arg0, %c0_i32 : i32, i32
  }
  func.func @transform_1(%arg0: i32) -> (i32, i32) {
    %c0_i32 = arith.constant 0 : i32
    %c0_i32_0 = arith.constant 0 : i32
    %c0_i32_1 = arith.constant 0 : i32
    return %c0_i32, %c0_i32_0 : i32, i32
  }
  func.func @transform_2(%arg0: i32) -> (i32, i32) {
    %c0_i32 = arith.constant 0 : i32
    %c0_i32_0 = arith.constant 0 : i32
    %c0_i32_1 = arith.constant 0 : i32
    return %c0_i32, %c0_i32_0 : i32, i32
  }
  func.func @transform_3(%arg0: i32) -> (i32, i32) {
    %c0_i32 = arith.constant 0 : i32
    %c0_i32_0 = arith.constant 0 : i32
    %c0_i32_1 = arith.constant 0 : i32
    return %c0_i32, %c0_i32_0 : i32, i32
  }
  func.func @transform_4(%arg0: i32) -> (i32, i32) {
    %c0_i32 = arith.constant 0 : i32
    %c0_i32_0 = arith.constant 0 : i32
    %c0_i32_1 = arith.constant 0 : i32
    return %c0_i32, %c0_i32_0 : i32, i32
  }
  func.func @transform_5(%arg0: i32) -> (i32, i32) {
    %c0_i32 = arith.constant 0 : i32
    %c0_i32_0 = arith.constant 0 : i32
    %c0_i32_1 = arith.constant 0 : i32
    return %c0_i32, %c0_i32_0 : i32, i32
  }
  func.func @transform_6(%arg0: i32) -> (i32, i32) {
    %c0_i32 = arith.constant 0 : i32
    %c0_i32_0 = arith.constant 0 : i32
    return %arg0, %c0_i32 : i32, i32
  }
}

</mosaic_0001>

<bundles_post_ra>
// kernel: tpu_custom_call.1
= control target key start
LH: loop header
LB: loop body
LE: loop exit
PB: predicated region body
PF: predicated region fallthrough
CT: control target
= control target key end

     0   :  { %11 = vsyncpa [#allocation3], 0  ;;  %s561_s0 = inlined_call_operand.hbm [shape: f32[8,5], index: 0, kind: input, shape index: {}]   ;;  %s562_s1 = inlined_call_operand.hbm [shape: f32[5,32], index: 1, kind: input, shape index: {}]   ;;  %s563_s2 = inlined_call_operand.hbm [shape: bf16[32,32], index: 2, kind: input, shape index: {}]   ;;  %s564_s3 = inlined_call_operand.vmem [shape: f32[1,32], index: 3, kind: input, shape index: {}]   ;;  %s565_s4 = inlined_call_operand.hbm [shape: f32[32,128], index: 4, kind: input, shape index: {}]   ;;  %s566_s5 = inlined_call_operand.vmem [shape: f32[1,128], index: 5, kind: input, shape index: {}]   ;;  %s567_s6 = inlined_call_operand.hbm [shape: f32[8,128], index: 6, kind: output, shape index: {}]  }
   0x1   :  { %12 = vsyncpa [#allocation6], 0 }
   0x2   :  { %13 = vsyncpa [#allocation9], 0 }
   0x3   :  { %14 = vsyncpa [#allocation4], 0  ;;  %s492_s21 = smov [#allocation5]   ;;  %s493_s23 = smov [#allocation2]  }
   0x4   :  { %s31_s22 = sshll.u32 %s492_s21, 4  ;;  %s21_s24 = sshll.u32 %s493_s23, 4  ;;  %s32_s22 = int_to_ptr.vmem [resolvable:$true] %s31_s22  ;;  %s22_s24 = int_to_ptr.vmem [resolvable:$true] %s21_s24 }
   0x5   :  { %s392_s25 = scalar_lea.vmem %s32_s22, 128  ;;  %p397_p1 = scmp.lt.s32.totalorder %s32_s22, %s32_s22 }
   0x6   :  { %p393_p0 = scmp.ne.s32.totalorder %s32_s22, %s392_s25  ;;  %p398_p2 = scmp.lt.s32.totalorder %s392_s25, %s392_s25 }
   0x8   :  { %p399_p3 = por %p398_p2, %p397_p1 }
   0xa   :  { %p400_p4 = pnand %p399_p3, %p393_p0 }
   0xc   :  { %403 = shalt.err (!%p400_p4)
}
   0xd   :  { %34 = dma.hbm_to_vmem [thread:$0]  %s562_s1, 128, %s32_s22, [#allocation6]  }
   0xe   :  { %s412_s28 = scalar_lea.vmem %s22_s24, 128  ;;  %p417_p6 = scmp.lt.s32.totalorder %s22_s24, %s22_s24 }
   0xf   :  { %p413_p5 = scmp.ne.s32.totalorder %s22_s24, %s412_s28  ;;  %p418_p7 = scmp.lt.s32.totalorder %s412_s28, %s412_s28 }
  0x11   :  { %p419_p8 = por %p418_p7, %p417_p6 }
  0x13   :  { %p420_p9 = pnand %p419_p8, %p413_p5 }
  0x15   :  { %423 = shalt.err (!%p420_p9)
}
  0x16   :  { %24 = dma.hbm_to_vmem [thread:$0]  %s561_s0, 128, %s22_s24, [#allocation3]  }
  0x17   :  { %s494_s7 = smov [#allocation7]  }
  0x18   :  { %s40_s8 = sshll.u32 %s494_s7, 4  ;;  %s41_s8 = int_to_ptr.vmem [resolvable:$true] %s40_s8 }
  0x19   :  { %s432_s9 = scalar_lea.vmem %s41_s8, 256  ;;  %p437_p11 = scmp.lt.s32.totalorder %s41_s8, %s41_s8 }
  0x1a   :  { %p433_p10 = scmp.ne.s32.totalorder %s41_s8, %s432_s9  ;;  %p438_p12 = scmp.lt.s32.totalorder %s432_s9, %s432_s9 }
  0x1c   :  { %p439_p13 = por %p438_p12, %p437_p11 }
  0x1e   :  { %p440_p0 = pnand %p439_p13, %p433_p10 }
  0x20   :  { %443 = shalt.err (!%p440_p0)
}
  0x21   :  { %s495_s1 = smov 64   ;;  %s496_s10 = smov 4  }
  0x22   :  { %46 = dma.hbm_to_vmem [thread:$0]  %s563_s2, 256, %s41_s8, [#allocation6], %s495_s1, %s495_s1, %s496_s10  }
  0x23   :  { %s497_s13 = smov [#allocation8]  }
  0x24   :  { %s54_s14 = sshll.u32 %s497_s13, 4  ;;  %s55_s14 = int_to_ptr.vmem [resolvable:$true] %s54_s14 }
  0x25   :  { %s452_s0 = scalar_lea.vmem %s55_s14, 512  ;;  %p457_p2 = scmp.lt.s32.totalorder %s55_s14, %s55_s14 }
  0x26   :  { %p453_p1 = scmp.ne.s32.totalorder %s55_s14, %s452_s0  ;;  %p458_p3 = scmp.lt.s32.totalorder %s452_s0, %s452_s0 }
  0x28   :  { %p459_p4 = por %p458_p3, %p457_p2 }
  0x2a   :  { %p460_p5 = pnand %p459_p4, %p453_p1 }
  0x2c   :  { %463 = shalt.err (!%p460_p5)
}
  0x2d   :  { %s498_s15 = smov 128   ;;  %s499_s16 = smov 8  }
  0x2e   :  { %60 = dma.hbm_to_vmem [thread:$0]  %s565_s4, 512, %s55_s14, [#allocation9], %s498_s15, %s498_s15, %s499_s16  }
  0x2f   :  { %484 = dma.done.wait [#allocation3], 128  }
  0x30   :  { %485 = vsyncadd [#allocation3], 4294967168 }
  0x31   :  { %486 = dma.done.wait [#allocation6], 384  }
  0x32   :  { %487 = vsyncadd [#allocation6], 4294966912 }
  0x33   :  { %488 = dma.done.wait [#allocation9], 512  }
  0x34   :  { %489 = vsyncadd [#allocation9], 4294966784  ;;  %v500_v0 = vmov 0.0   ;;  %vm501_vm0 = vmmov 0   ;;  %vm82_vm1 = vcmask 1044480   ;;  %vm78_vm2 = vcmask 39936  }
  0x35   :  { %345 = vmatprep.subr.mxu0 %v500_v0  ;;  %347 = vmatprep.mubr.msk.f32.mxu0 %vm501_vm0, %v500_v0  ;;  %v77_v1 = vld [vmem:[#allocation5] sm:$0x1f]  ;;  %v76_v2 = vld [vmem:[#allocation2] sm:$0xff]  ;;  %v380_v3 = vld [vmem:[#allocation7 + $0x8] sm:$0xff]   ;;  %vm180_vm3 = vcmask 261120   ;;  %s502_s21 = smov [#allocation10]  }
  0x36   :  { %350 = vmatprep.subr.bf16.mxu1 %v500_v0  ;;  %354 = vmatprep.mubr.msk.bf16.mxu1 %vm501_vm0, %v500_v0  ;;  %v381_v4 = vld [vmem:[#allocation7] sm:$0xff]   ;;  %v228_v8 = vld [vmem:[#allocation8 + $0x18] sm:$0xff]  ;;  %v226_v10 = vld [vmem:[#allocation8 + $0x8] sm:$0xff]  ;;  %s316_s22 = sshll.u32 %s502_s21, 4  ;;  %s317_s22 = int_to_ptr.vmem [resolvable:$true] %s316_s22 }
  0x37   :  { %346 = vmatpush3.msk.msra.mxu0 %vm82_vm1, %v77_v1  ;;  %351 = vmatpush3.bf16.msra.mxu1 %v380_v3  ;;  %v227_v9 = vld [vmem:[#allocation8 + $0x10] sm:$0xff]  ;;  %v225_v11 = vld [vmem:[#allocation8] sm:$0xff]  ;;  %p469_p7 = scmp.lt.s32.totalorder %s317_s22, %s317_s22 }
  0x38   :  { %348 = vmatmul.mubr.msk.f32.vlgmr.msra.gmra.mxu0 %vm78_vm2, %v76_v2  ;;  %358 = vmatprep.subr.mxu0 %v500_v0  ;;  %v329_v12 = vld [vmem:[%s564_s3] ss:$0 sm:$0xff]  ;;  %s464_s3 = scalar_lea.vmem %s317_s22, 128 }
  0x39   :  { %366 = vmatprep.mubr.msk.f32.mxu0 %vm501_vm0, %v500_v0  ;;  %352 = vmatprep.subr.bf16.mxu1 %v500_v0  ;;  %v333_v19 = vld [vmem:[%s566_s5] ss:$0 sm:$0xff]  ;;  %p465_p6 = scmp.ne.s32.totalorder %s317_s22, %s464_s3  ;;  %p470_p8 = scmp.lt.s32.totalorder %s464_s3, %s464_s3 }
  0x3a   :  { %359 = vmatpush3.msra.mxu0 %v228_v8 }
  0x3b   :  { %353 = vmatpush3.bf16.msra.mxu1 %v381_v4  ;;  %360 = vmatprep.subr.mxu0 %v500_v0  ;;  %p471_p9 = por %p470_p8, %p469_p7 }
  0x3c   :  { %361 = vmatpush3.msra.mxu0 %v227_v9 }
  0x3d   :  { %362 = vmatprep.subr.mxu0 %v500_v0  ;;  %p472_p10 = pnand %p471_p9, %p465_p6 }
  0x3e   :  { %363 = vmatpush3.msra.mxu0 %v226_v10 }
  0x3f   :  { %364 = vmatprep.subr.mxu0 %v500_v0 }
  0x40   :  { %365 = vmatpush3.msra.mxu0 %v225_v11 }
  0xf8   :  { %v152_v5 = vpop.f32.mrf.mxu0 }
  0xf9   :  { %v156_v6 = vpack.c.bf16 %v152_v5, %v152_v5 }
  0xfa   :  { %v349_v7 = vpop.f32.mrf.mxu0 }
  0xfb   :  { %355 = vmatmul.mubr.msk.bf16.vlgmr.msra.gmra.mxu1 %vm180_vm3, %v156_v6 }
 0x1bb   :  { %v218_v13 = vpop.f32.mrf.mxu1 }
 0x1bc   :  { %v219_v14 = vadd.f32 %v329_v12, %v218_v13 }
 0x1bd   :  { %v356_v15 = vpop.f32.mrf.mxu1 }
 0x1be   :  { %382 = vtanh.f32 %v219_v14 }
 0x1bf   :  { %v221_v16 = vpop.f32.mrf.mxu1 }
 0x1c1   :  { %v357_v17 = vpop.f32.mrf.mxu1 }
 0x1cb   :  { %v383_v18 = vpop.eup %382 }
 0x1cc   :  { %367 = vmatmul.mubr.msk.f32.vlgmr.msra.gmra.mxu0 %vm180_vm3, %v383_v18 }
 0x28c   :  { %v305_v20 = vpop.f32.mrf.mxu0 }
 0x28d   :  { %v306_v21 = vadd.f32 %v333_v19, %v305_v20 }
 0x28e   :  { %v368_v22 = vpop.f32.mrf.mxu0 }
 0x28f   :  { %309 = vst [vmem:[#allocation10] sm:$0xff] %v306_v21 }
 0x290   :  { %475 = shalt.err (!%p472_p10)
}
 0x291   :  { %319 = dma.vmem_to_hbm [thread:$0]  %s317_s22, 128, %s567_s6, [#allocation4]  }
 0x292   :  { %490 = dma.done.wait [#allocation4], 128  }
 0x293   :  { %491 = vsyncadd [#allocation4], 4294967168 }
 0x294   :  { %323 = vsyncpa [#allocation3], 1 }
 0x295   :  { %324 = vsyncpa [#allocation6], 1 }
 0x296   :  { %325 = vsyncpa [#allocation9], 1 }
 0x297   :  { %326 = vsyncpa [#allocation4], 1 }

// kernel: tpu_custom_call.1
= control target key start
LH: loop header
LB: loop body
LE: loop exit
PB: predicated region body
PF: predicated region fallthrough
CT: control target
= control target key end

     0   :  { %11 = vsyncpa [#allocation3], 0  ;;  %s561_s0 = inlined_call_operand.hbm [shape: f32[8,5], index: 0, kind: input, shape index: {}]   ;;  %s562_s1 = inlined_call_operand.hbm [shape: f32[5,32], index: 1, kind: input, shape index: {}]   ;;  %s563_s2 = inlined_call_operand.hbm [shape: bf16[32,32], index: 2, kind: input, shape index: {}]   ;;  %s564_s3 = inlined_call_operand.vmem [shape: f32[1,32], index: 3, kind: input, shape index: {}]   ;;  %s565_s4 = inlined_call_operand.hbm [shape: f32[32,128], index: 4, kind: input, shape index: {}]   ;;  %s566_s5 = inlined_call_operand.vmem [shape: f32[1,128], index: 5, kind: input, shape index: {}]   ;;  %s567_s6 = inlined_call_operand.hbm [shape: f32[8,128], index: 6, kind: output, shape index: {}]  }
   0x1   :  { %12 = vsyncpa [#allocation6], 0 }
   0x2   :  { %13 = vsyncpa [#allocation9], 0 }
   0x3   :  { %14 = vsyncpa [#allocation4], 0  ;;  %s492_s21 = smov [#allocation5]   ;;  %s493_s23 = smov [#allocation2]  }
   0x4   :  { %s31_s22 = sshll.u32 %s492_s21, 4  ;;  %s21_s24 = sshll.u32 %s493_s23, 4  ;;  %s32_s22 = int_to_ptr.vmem [resolvable:$true] %s31_s22  ;;  %s22_s24 = int_to_ptr.vmem [resolvable:$true] %s21_s24 }
   0x5   :  { %s392_s25 = scalar_lea.vmem %s32_s22, 128  ;;  %p397_p1 = scmp.lt.s32.totalorder %s32_s22, %s32_s22 }
   0x6   :  { %p393_p0 = scmp.ne.s32.totalorder %s32_s22, %s392_s25  ;;  %p398_p2 = scmp.lt.s32.totalorder %s392_s25, %s392_s25 }
   0x8   :  { %p399_p3 = por %p398_p2, %p397_p1 }
   0xa   :  { %p400_p4 = pnand %p399_p3, %p393_p0 }
   0xc   :  { %403 = shalt.err (!%p400_p4)
}
   0xd   :  { %34 = dma.hbm_to_vmem [thread:$0]  %s562_s1, 128, %s32_s22, [#allocation6]  }
   0xe   :  { %s412_s28 = scalar_lea.vmem %s22_s24, 128  ;;  %p417_p6 = scmp.lt.s32.totalorder %s22_s24, %s22_s24 }
   0xf   :  { %p413_p5 = scmp.ne.s32.totalorder %s22_s24, %s412_s28  ;;  %p418_p7 = scmp.lt.s32.totalorder %s412_s28, %s412_s28 }
  0x11   :  { %p419_p8 = por %p418_p7, %p417_p6 }
  0x13   :  { %p420_p9 = pnand %p419_p8, %p413_p5 }
  0x15   :  { %423 = shalt.err (!%p420_p9)
}
  0x16   :  { %24 = dma.hbm_to_vmem [thread:$0]  %s561_s0, 128, %s22_s24, [#allocation3]  }
  0x17   :  { %s494_s7 = smov [#allocation7]  }
  0x18   :  { %s40_s8 = sshll.u32 %s494_s7, 4  ;;  %s41_s8 = int_to_ptr.vmem [resolvable:$true] %s40_s8 }
  0x19   :  { %s432_s9 = scalar_lea.vmem %s41_s8, 256  ;;  %p437_p11 = scmp.lt.s32.totalorder %s41_s8, %s41_s8 }
  0x1a   :  { %p433_p10 = scmp.ne.s32.totalorder %s41_s8, %s432_s9  ;;  %p438_p12 = scmp.lt.s32.totalorder %s432_s9, %s432_s9 }
  0x1c   :  { %p439_p13 = por %p438_p12, %p437_p11 }
  0x1e   :  { %p440_p0 = pnand %p439_p13, %p433_p10 }
  0x20   :  { %443 = shalt.err (!%p440_p0)
}
  0x21   :  { %s495_s1 = smov 64   ;;  %s496_s10 = smov 4  }
  0x22   :  { %46 = dma.hbm_to_vmem [thread:$0]  %s563_s2, 256, %s41_s8, [#allocation6], %s495_s1, %s495_s1, %s496_s10  }
  0x23   :  { %s497_s13 = smov [#allocation8]  }
  0x24   :  { %s54_s14 = sshll.u32 %s497_s13, 4  ;;  %s55_s14 = int_to_ptr.vmem [resolvable:$true] %s54_s14 }
  0x25   :  { %s452_s0 = scalar_lea.vmem %s55_s14, 512  ;;  %p457_p2 = scmp.lt.s32.totalorder %s55_s14, %s55_s14 }
  0x26   :  { %p453_p1 = scmp.ne.s32.totalorder %s55_s14, %s452_s0  ;;  %p458_p3 = scmp.lt.s32.totalorder %s452_s0, %s452_s0 }
  0x28   :  { %p459_p4 = por %p458_p3, %p457_p2 }
  0x2a   :  { %p460_p5 = pnand %p459_p4, %p453_p1 }
  0x2c   :  { %463 = shalt.err (!%p460_p5)
}
  0x2d   :  { %s498_s15 = smov 128   ;;  %s499_s16 = smov 8  }
  0x2e   :  { %60 = dma.hbm_to_vmem [thread:$0]  %s565_s4, 512, %s55_s14, [#allocation9], %s498_s15, %s498_s15, %s499_s16  }
  0x2f   :  { %484 = dma.done.wait [#allocation3], 128  }
  0x30   :  { %485 = vsyncadd [#allocation3], 4294967168 }
  0x31   :  { %486 = dma.done.wait [#allocation6], 384  }
  0x32   :  { %487 = vsyncadd [#allocation6], 4294966912 }
  0x33   :  { %488 = dma.done.wait [#allocation9], 512  }
  0x34   :  { %489 = vsyncadd [#allocation9], 4294966784  ;;  %v500_v0 = vmov 0.0   ;;  %vm501_vm0 = vmmov 0   ;;  %vm82_vm1 = vcmask 1044480   ;;  %vm78_vm2 = vcmask 39936  }
  0x35   :  { %345 = vmatprep.subr.mxu0 %v500_v0  ;;  %347 = vmatprep.mubr.msk.f32.mxu0 %vm501_vm0, %v500_v0  ;;  %v77_v1 = vld [vmem:[#allocation5] sm:$0x1f]  ;;  %v76_v2 = vld [vmem:[#allocation2] sm:$0xff]  ;;  %v380_v3 = vld [vmem:[#allocation7 + $0x8] sm:$0xff]   ;;  %vm180_vm3 = vcmask 261120   ;;  %s502_s21 = smov [#allocation10]  }
  0x36   :  { %350 = vmatprep.subr.bf16.mxu1 %v500_v0  ;;  %354 = vmatprep.mubr.msk.bf16.mxu1 %vm501_vm0, %v500_v0  ;;  %v381_v4 = vld [vmem:[#allocation7] sm:$0xff]   ;;  %v228_v8 = vld [vmem:[#allocation8 + $0x18] sm:$0xff]  ;;  %v226_v10 = vld [vmem:[#allocation8 + $0x8] sm:$0xff]  ;;  %s316_s22 = sshll.u32 %s502_s21, 4  ;;  %s317_s22 = int_to_ptr.vmem [resolvable:$true] %s316_s22 }
  0x37   :  { %346 = vmatpush3.msk.msra.mxu0 %vm82_vm1, %v77_v1  ;;  %351 = vmatpush3.bf16.msra.mxu1 %v380_v3  ;;  %v227_v9 = vld [vmem:[#allocation8 + $0x10] sm:$0xff]  ;;  %v225_v11 = vld [vmem:[#allocation8] sm:$0xff]  ;;  %p469_p7 = scmp.lt.s32.totalorder %s317_s22, %s317_s22 }
  0x38   :  { %348 = vmatmul.mubr.msk.f32.vlgmr.msra.gmra.mxu0 %vm78_vm2, %v76_v2  ;;  %358 = vmatprep.subr.mxu0 %v500_v0  ;;  %v329_v12 = vld [vmem:[%s564_s3] ss:$0 sm:$0xff]  ;;  %s464_s3 = scalar_lea.vmem %s317_s22, 128 }
  0x39   :  { %366 = vmatprep.mubr.msk.f32.mxu0 %vm501_vm0, %v500_v0  ;;  %352 = vmatprep.subr.bf16.mxu1 %v500_v0  ;;  %v333_v19 = vld [vmem:[%s566_s5] ss:$0 sm:$0xff]  ;;  %p465_p6 = scmp.ne.s32.totalorder %s317_s22, %s464_s3  ;;  %p470_p8 = scmp.lt.s32.totalorder %s464_s3, %s464_s3 }
  0x3a   :  { %359 = vmatpush3.msra.mxu0 %v228_v8 }
  0x3b   :  { %353 = vmatpush3.bf16.msra.mxu1 %v381_v4  ;;  %360 = vmatprep.subr.mxu0 %v500_v0  ;;  %p471_p9 = por %p470_p8, %p469_p7 }
  0x3c   :  { %361 = vmatpush3.msra.mxu0 %v227_v9 }
  0x3d   :  { %362 = vmatprep.subr.mxu0 %v500_v0  ;;  %p472_p10 = pnand %p471_p9, %p465_p6 }
  0x3e   :  { %363 = vmatpush3.msra.mxu0 %v226_v10 }
  0x3f   :  { %364 = vmatprep.subr.mxu0 %v500_v0 }
  0x40   :  { %365 = vmatpush3.msra.mxu0 %v225_v11 }
  0xf8   :  { %v152_v5 = vpop.f32.mrf.mxu0 }
  0xf9   :  { %v156_v6 = vpack.c.bf16 %v152_v5, %v152_v5 }
  0xfa   :  { %v349_v7 = vpop.f32.mrf.mxu0 }
  0xfb   :  { %355 = vmatmul.mubr.msk.bf16.vlgmr.msra.gmra.mxu1 %vm180_vm3, %v156_v6 }
 0x1bb   :  { %v218_v13 = vpop.f32.mrf.mxu1 }
 0x1bc   :  { %v219_v14 = vadd.f32 %v329_v12, %v218_v13 }
 0x1bd   :  { %v356_v15 = vpop.f32.mrf.mxu1 }
 0x1be   :  { %382 = vtanh.f32 %v219_v14 }
 0x1bf   :  { %v221_v16 = vpop.f32.mrf.mxu1 }
 0x1c1   :  { %v357_v17 = vpop.f32.mrf.mxu1 }
 0x1cb   :  { %v383_v18 = vpop.eup %382 }
 0x1cc   :  { %367 = vmatmul.mubr.msk.f32.vlgmr.msra.gmra.mxu0 %vm180_vm3, %v383_v18 }
 0x28c   :  { %v305_v20 = vpop.f32.mrf.mxu0 }
 0x28d   :  { %v306_v21 = vadd.f32 %v333_v19, %v305_v20 }
 0x28e   :  { %v368_v22 = vpop.f32.mrf.mxu0 }
 0x28f   :  { %309 = vst [vmem:[#allocation10] sm:$0xff] %v306_v21 }
 0x290   :  { %475 = shalt.err (!%p472_p10)
}
 0x291   :  { %319 = dma.vmem_to_hbm [thread:$0]  %s317_s22, 128, %s567_s6, [#allocation4]  }
 0x292   :  { %490 = dma.done.wait [#allocation4], 128  }
 0x293   :  { %491 = vsyncadd [#allocation4], 4294967168 }
 0x294   :  { %323 = vsyncpa [#allocation3], 1 }
 0x295   :  { %324 = vsyncpa [#allocation6], 1 }
 0x296   :  { %325 = vsyncpa [#allocation9], 1 }
 0x297   :  { %326 = vsyncpa [#allocation4], 1 }

</bundles_post_ra>
